<compile_context>
chip_gen: v5e
topology: v5e:2x2
jax: 0.10.0
libtpu: 0.0.40
codegen_flags: <defaults>
</compile_context>

<pallas_src>
import functools

import jax
import jax.numpy as jnp
from jax.experimental import pallas as pl
from jax.experimental.pallas import tpu as pltpu


_NEG_LARGE = -1e30   # finite stand-in for -inf (avoids inf-inf -> NaN rows)
_STATS_W = 128       # lane-dense packed stats width (idx | sel | pt_e | pt_c | 0...)


def _choose_block_batch(B):
    """Batch rows per grid step (TB)."""
    if B < 16:
        return B                       # whole (small) batch in one grid step
    tb = 8 * ((B // 2 + 7) // 8)       # multiple of 8, >= 2 steps (v7x megacore)
    return min(tb, 512)


def _actor_kernel(nodes_ref, grapha_ref, mask_ref, de_ref, dc_ref,
                  w_eff_ref, b_eff_ref, v_ref, c_ref,
                  p_ref, stats_ref, *, C):
    TB, J, H = nodes_ref.shape
    out_w = stats_ref.shape[-1]

    g = grapha_ref[...]                                                      # (TB, H)

    # Folded query projection: a single MXU matmul (wq^T*scale @ wk pre-folded).
    q2 = jnp.dot(g, w_eff_ref[...],
                 preferred_element_type=jnp.float32) + b_eff_ref[...]        # (TB, H)
    # Per-row scalar bias  q . bk  in folded form  g @ v + c  (VPU + lane reduce).
    bias = jnp.sum(g * v_ref[...], axis=-1, keepdims=True) + c_ref[...]      # (TB, 1)

    # score_j = q2 . nodes_j  -- broadcast multiply + lane reduce (H on lanes);
    # avoids TB tiny per-row matmuls at J=8, H=32 and keeps the MXU free.
    score = jnp.sum(q2[:, None, :] * nodes_ref[...], axis=-1)                # (TB, J)

    temp = jnp.tanh(score + bias) * C
    temp = jnp.where(mask_ref[...] > 0, _NEG_LARGE, temp)                    # (TB, J)

    # softmax over jobs; denominator reciprocal runs on the EUP (free slot)
    m = jnp.max(temp, axis=-1, keepdims=True)
    e = jnp.exp(temp - m)
    denom = jnp.sum(e, axis=-1, keepdims=True)
    p = e * pl.reciprocal(denom, approx=True)                                # (TB, J)
    p_ref[...] = p

    # fused greedy selection + selected probability + process_time gather
    pmax = jnp.max(p, axis=-1, keepdims=True)                                # (TB, 1)
    col = jax.lax.broadcasted_iota(jnp.int32, (TB, J), 1)
    idx = jnp.min(jnp.where(p >= pmax, col, J), axis=-1, keepdims=True)      # first argmax
    onehot = (col == idx).astype(jnp.float32)                                # (TB, J)
    pt_e = jnp.sum(de_ref[...] * onehot, axis=-1, keepdims=True)             # (TB, 1)
    pt_c = jnp.sum(dc_ref[...] * onehot, axis=-1, keepdims=True)             # (TB, 1)
    idx_f = pltpu.bitcast(idx, jnp.float32)                                  # bit-exact int32

    # consolidated, lane-dense stats slab: [idx_bits | sel | pt_edge | pt_cloud | 0...]
    colw = jax.lax.broadcasted_iota(jnp.int32, (TB, out_w), 1)
    stats = jnp.zeros((TB, out_w), jnp.float32)
    stats = jnp.where(colw == 0, idx_f, stats)
    stats = jnp.where(colw == 1, pmax, stats)
    stats = jnp.where(colw == 2, pt_e, stats)
    stats = jnp.where(colw == 3, pt_c, stats)
    stats_ref[...] = stats


def prepare_actor_params(wq, bq, wk, bk, hidden_dim, M):
    """Fold wq, bq, wk, bk and 1/sqrt(dk) into the kernel's weights.

    Weight-only; do this ONCE per parameter update and cache the result.
      q2   = g @ W_eff + b_eff       (== scaled query @ wk)
      bias = g @ v + c               (== scaled query . bk)
    """
    hi = jax.lax.Precision.HIGHEST
    dk = hidden_dim / M
    s = jnp.float32(dk ** -0.5)
    wq_ts = wq.astype(jnp.float32).T * s                 # x @ wq_ts == s * (x @ wq.T)
    bq_s = bq.astype(jnp.float32) * s
    wkf = wk.astype(jnp.float32)
    bkf = bk.astype(jnp.float32)
    w_eff = jnp.dot(wq_ts, wkf, precision=hi)                            # (H, H)
    b_eff = jnp.dot(bq_s, wkf, precision=hi).reshape(1, hidden_dim)      # (1, H)
    v = jnp.dot(wq_ts, bkf, precision=hi).reshape(1, hidden_dim)         # (1, H)
    c = jnp.dot(bq_s, bkf, precision=hi).reshape(1, 1)                   # (1, 1)
    return w_eff, b_eff, v, c


def actor_select_pallas(nodes, grapha, mask, dur_edge, dur_cloud, folded_params,
                        *, C=10.0):
    """Fused task_actor hot path.

    Returns:
      p   : (B, J) softmax attention over jobs
      idx : (B,)   greedy action index (argmax over jobs)
      sel : (B,)   probability of the selected action p[b, idx[b]]
      pt  : (B, 2) [dur_edge[b, idx[b]], dur_cloud[b, idx[b]]]
    """
    w_eff, b_eff, v, c = folded_params
    B, J, H = nodes.shape

    # Inputs are expected to already live in their compute dtypes; these casts
    # are no-ops in that case (JAX short-circuits same-dtype converts).
    nodes = nodes.astype(jnp.float32)
    grapha = grapha.astype(jnp.float32)
    mask = mask.astype(jnp.int32)
    dur_edge = dur_edge.astype(jnp.float32)
    dur_cloud = dur_cloud.astype(jnp.float32)

    TB = _choose_block_batch(B)
    steps = pl.cdiv(B, TB)

    kernel = functools.partial(_actor_kernel, C=C)

    p, stats = pl.pallas_call(
        kernel,
        out_shape=(
            jax.ShapeDtypeStruct((B, J), jnp.float32),
            jax.ShapeDtypeStruct((B, _STATS_W), jnp.float32),
        ),
        grid=(steps,),
        in_specs=[
            pl.BlockSpec((TB, J, H), lambda i: (i, 0, 0)),   # nodes
            pl.BlockSpec((TB, H), lambda i: (i, 0)),         # grapha
            pl.BlockSpec((TB, J), lambda i: (i, 0)),         # mask
            pl.BlockSpec((TB, J), lambda i: (i, 0)),         # dur_edge
            pl.BlockSpec((TB, J), lambda i: (i, 0)),         # dur_cloud
            pl.BlockSpec((H, H), lambda i: (0, 0)),          # W_eff (wq^T*s @ wk)
            pl.BlockSpec((1, H), lambda i: (0, 0)),          # b_eff
            pl.BlockSpec((1, H), lambda i: (0, 0)),          # v
            pl.BlockSpec((1, 1), lambda i: (0, 0)),          # c
        ],
        out_specs=(
            pl.BlockSpec((TB, J), lambda i: (i, 0)),             # p
            pl.BlockSpec((TB, _STATS_W), lambda i: (i, 0)),      # packed stats
        ),
        compiler_params=pltpu.CompilerParams(
            dimension_semantics=("parallel",)),
    )(nodes, grapha, mask, dur_edge, dur_cloud, w_eff, b_eff, v, c)

    idx = jax.lax.bitcast_convert_type(stats[:, 0], jnp.int32)
    sel = stats[:, 1]
    pt = stats[:, 2:4]
    return p, idx, sel, pt


def task_actor_forward(nodes, grapha, mask, folded_params, data, index,
                       action_probability, train=0):
    """Mirrors task_actor.forward semantics for the greedy action branch."""
    B, J, _ = nodes.shape
    datasize, T, dur_edge, dur_cloud, dur_send = data

    p, action_index, sel_prob, process_time = actor_select_pallas(
        nodes, grapha, mask, dur_edge, dur_cloud, folded_params)

    # action_probability[n_j * i + index] = p[i, action_index[i]]
    tag = jnp.arange(B, dtype=jnp.int32) * J
    action_probability = action_probability.at[tag + index].set(sel_prob)

    return action_index, action_probability, process_time


def _reference(nodes, grapha, mask, dur_edge, dur_cloud, wq, bq, wk, bk, M):
    hi = jax.lax.Precision.HIGHEST
    B, J, H = nodes.shape
    dk = H / M
    query = jnp.dot(grapha, wq.T, precision=hi) + bq                # (B, H)
    key = jnp.einsum("bjh,dh->bjd", nodes, wk, precision=hi) + bk   # (B, J, H)
    temp = jnp.sum(query[:, None, :] * key, axis=-1) / (dk ** 0.5)
    temp = jnp.tanh(temp) * 10.0
    temp = jnp.where(mask > 0, -jnp.inf, temp)
    p = jax.nn.softmax(temp, axis=1)
    idx = jnp.argmax(p, axis=1)
    rows = jnp.arange(B)
    pt = jnp.stack([dur_edge[rows, idx], dur_cloud[rows, idx]], axis=1)
    return p, idx, pt


if __name__ == "__main__":
    B, J, H, M = 2, 8, 32, 4       # batch, n_j jobs, hidden_dim, heads

    key = jax.random.PRNGKey(0)
    ks = jax.random.split(key, 10)

    # Encoder outputs (synthetic — Encoder is external; see TODO above)
    nodes = jax.random.normal(ks[0], (B, J, H), dtype=jnp.float32)
    grapha = jax.random.normal(ks[1], (B, H), dtype=jnp.float32)

    # nn.Linear parameters (deterministic init)
    wq = 0.1 * jax.random.normal(ks[2], (H, H), dtype=jnp.float32)
    bq = 0.1 * jax.random.normal(ks[3], (H,), dtype=jnp.float32)
    wk = 0.1 * jax.random.normal(ks[4], (H, H), dtype=jnp.float32)
    bk = 0.1 * jax.random.normal(ks[5], (H,), dtype=jnp.float32)

    # fold weights once per parameter update (weight-only, cached across steps)
    folded = prepare_actor_params(wq, bq, wk, bk, H, M)

    # mask: first job masked in batch 0, last job masked in batch 1
    mask = jnp.zeros((B, J), dtype=jnp.int32).at[0, 0].set(1).at[1, J - 1].set(1)

    # data = (datasize, T, dur_edge_execution, dur_cloud_execution, dur_sending)
    datasize = jax.random.uniform(ks[6], (B, J), dtype=jnp.float32)
    T = jax.random.uniform(ks[7], (B, J), dtype=jnp.float32)
    dur_edge = jax.random.uniform(ks[8], (B, J), dtype=jnp.float32)
    dur_cloud = jax.random.uniform(ks[9], (B, J), dtype=jnp.float32)
    dur_send = jnp.ones((B, J), dtype=jnp.float32)
    data = (datasize, T, dur_edge, dur_cloud, dur_send)

    action_probability = jnp.zeros((B * J,), dtype=jnp.float32)
    index = 0

    action_index, action_probability, process_time = task_actor_forward(
        nodes, grapha, mask, folded, data, index, action_probability, train=0)
    jax.block_until_ready((action_index, action_probability, process_time))

    # correctness check of the fused Pallas path against a pure-JAX reference
    p_ker, idx_ker, sel_ker, pt_ker = actor_select_pallas(
        nodes, grapha, mask, dur_edge, dur_cloud, folded)
    p_exp, idx_exp, pt_exp = _reference(
        nodes, grapha, mask, dur_edge, dur_cloud, wq, bq, wk, bk, M)

    assert jnp.allclose(p_ker, p_exp, atol=5e-3, rtol=5e-3), "p mismatch vs reference"
    assert jnp.array_equal(idx_ker, idx_exp.astype(idx_ker.dtype)), "action index mismatch"
    assert jnp.allclose(sel_ker, jnp.max(p_exp, axis=1), atol=5e-3), "selected prob mismatch"
    assert jnp.allclose(pt_ker, pt_exp, atol=1e-6), "process_time mismatch"

    print("KERNEL_OK")
</pallas_src>

<mosaic_0001>
module attributes {stable_mosaic.version = 11 : i64} {
  func.func @_actor_kernel(%arg0: i32, %arg1: memref<2x8x32xf32, #tpu.memory_space<vmem>>, %arg2: memref<2x32xf32, #tpu.memory_space<vmem>>, %arg3: memref<2x8xi32, #tpu.memory_space<vmem>>, %arg4: memref<2x8xf32, #tpu.memory_space<vmem>>, %arg5: memref<2x8xf32, #tpu.memory_space<vmem>>, %arg6: memref<32x32xf32, #tpu.memory_space<vmem>>, %arg7: memref<1x32xf32, #tpu.memory_space<vmem>>, %arg8: memref<1x32xf32, #tpu.memory_space<vmem>>, %arg9: memref<1x1xf32, #tpu.memory_space<vmem>>, %arg10: memref<2x8xf32, #tpu.memory_space<vmem>>, %arg11: memref<2x128xf32, #tpu.memory_space<vmem>>) attributes {dimension_semantics = [#tpu.dimension_semantics<parallel>], iteration_bounds = array<i64: 1>, scalar_prefetch = 0 : i64, scratch_operands = 0 : i64, tpu.core_type = #tpu.core_type<tc>, window_params = [{transform_indices = @transform_0, window_bounds = array<i64: 2, 8, 32>}, {transform_indices = @transform_1, window_bounds = array<i64: 2, 32>}, {transform_indices = @transform_2, window_bounds = array<i64: 2, 8>}, {transform_indices = @transform_3, window_bounds = array<i64: 2, 8>}, {transform_indices = @transform_4, window_bounds = array<i64: 2, 8>}, {pipeline_mode = #tpu.pipeline_mode<synchronous>, transform_indices = @transform_5, window_bounds = array<i64: 32, 32>}, {pipeline_mode = #tpu.pipeline_mode<synchronous>, transform_indices = @transform_6, window_bounds = array<i64: 1, 32>}, {pipeline_mode = #tpu.pipeline_mode<synchronous>, transform_indices = @transform_7, window_bounds = array<i64: 1, 32>}, {pipeline_mode = #tpu.pipeline_mode<synchronous>, transform_indices = @transform_8, window_bounds = array<i64: 1, 1>}, {transform_indices = @transform_9, window_bounds = array<i64: 2, 8>}, {transform_indices = @transform_10, window_bounds = array<i64: 2, 128>}]} {
    %c0 = arith.constant 0 : index
    %c0_0 = arith.constant 0 : index
    %0 = vector.load %arg2[%c0, %c0_0] : memref<2x32xf32, #tpu.memory_space<vmem>>, vector<2x32xf32>
    %c0_1 = arith.constant 0 : index
    %c0_2 = arith.constant 0 : index
    %1 = vector.load %arg6[%c0_1, %c0_2] : memref<32x32xf32, #tpu.memory_space<vmem>>, vector<32x32xf32>
    %cst = arith.constant dense<0.000000e+00> : vector<2x32xf32>
    %2 = tpu.matmul %0, %1, %cst {dimension_numbers = #tpu.dot_dimension_numbers<[1], [0], [0], [1], [0, 0, 1, 1], [], []>} : vector<2x32xf32>, vector<32x32xf32>, vector<2x32xf32> -> vector<2x32xf32>
    %c0_3 = arith.constant 0 : index
    %c0_4 = arith.constant 0 : index
    %3 = vector.load %arg7[%c0_3, %c0_4] : memref<1x32xf32, #tpu.memory_space<vmem>>, vector<1x32xf32>
    %4 = vector.broadcast %3 : vector<1x32xf32> to vector<2x32xf32>
    %5 = arith.addf %2, %4 : vector<2x32xf32>
    %c0_5 = arith.constant 0 : index
    %c0_6 = arith.constant 0 : index
    %6 = vector.load %arg8[%c0_5, %c0_6] : memref<1x32xf32, #tpu.memory_space<vmem>>, vector<1x32xf32>
    %7 = vector.broadcast %6 : vector<1x32xf32> to vector<2x32xf32>
    %8 = arith.mulf %0, %7 : vector<2x32xf32>
    %cst_7 = arith.constant dense<0.000000e+00> : vector<2xf32>
    %9 = vector.multi_reduction <add>, %8, %cst_7 [1] : vector<2x32xf32> to vector<2xf32>
    %10 = vector.shape_cast %9 : vector<2xf32> to vector<2x1xf32>
    %c0_8 = arith.constant 0 : index
    %c0_9 = arith.constant 0 : index
    %11 = vector.load %arg9[%c0_8, %c0_9] : memref<1x1xf32, #tpu.memory_space<vmem>>, vector<1x1xf32>
    %12 = vector.broadcast %11 : vector<1x1xf32> to vector<2x1xf32>
    %13 = arith.addf %10, %12 : vector<2x1xf32>
    %14 = vector.shape_cast %5 : vector<2x32xf32> to vector<2x1x32xf32>
    %c0_10 = arith.constant 0 : index
    %c0_11 = arith.constant 0 : index
    %c0_12 = arith.constant 0 : index
    %15 = vector.load %arg1[%c0_10, %c0_11, %c0_12] : memref<2x8x32xf32, #tpu.memory_space<vmem>>, vector<2x8x32xf32>
    %16 = vector.broadcast %14 : vector<2x1x32xf32> to vector<2x8x32xf32>
    %17 = arith.mulf %16, %15 : vector<2x8x32xf32>
    %cst_13 = arith.constant dense<0.000000e+00> : vector<2x8xf32>
    %18 = vector.multi_reduction <add>, %17, %cst_13 [2] : vector<2x8x32xf32> to vector<2x8xf32>
    %19 = vector.broadcast %13 : vector<2x1xf32> to vector<2x8xf32>
    %20 = arith.addf %18, %19 : vector<2x8xf32>
    %21 = math.tanh %20 : vector<2x8xf32>
    %cst_14 = arith.constant 1.000000e+01 : f32
    %22 = vector.broadcast %cst_14 : f32 to vector<2x8xf32>
    %23 = arith.mulf %21, %22 : vector<2x8xf32>
    %c0_15 = arith.constant 0 : index
    %c0_16 = arith.constant 0 : index
    %24 = vector.load %arg3[%c0_15, %c0_16] : memref<2x8xi32, #tpu.memory_space<vmem>>, vector<2x8xi32>
    %c0_i32 = arith.constant 0 : i32
    %25 = vector.broadcast %c0_i32 : i32 to vector<2x8xi32>
    %26 = arith.cmpi sgt, %24, %25 : vector<2x8xi32>
    %cst_17 = arith.constant -1.000000e+30 : f32
    %27 = vector.broadcast %cst_17 : f32 to vector<2x8xf32>
    %28 = arith.select %26, %27, %23 : vector<2x8xi1>, vector<2x8xf32>
    %cst_18 = arith.constant dense<0xFF800000> : vector<2xf32>
    %29 = vector.multi_reduction <maximumf>, %28, %cst_18 [1] : vector<2x8xf32> to vector<2xf32>
    %30 = vector.shape_cast %29 : vector<2xf32> to vector<2x1xf32>
    %31 = vector.broadcast %30 : vector<2x1xf32> to vector<2x8xf32>
    %32 = arith.subf %28, %31 : vector<2x8xf32>
    %33 = math.exp %32 : vector<2x8xf32>
    %cst_19 = arith.constant dense<0.000000e+00> : vector<2xf32>
    %34 = vector.multi_reduction <add>, %33, %cst_19 [1] : vector<2x8xf32> to vector<2xf32>
    %35 = vector.shape_cast %34 : vector<2xf32> to vector<2x1xf32>
    %36 = tpu.reciprocal %35 {approx = true} : vector<2x1xf32> -> vector<2x1xf32>
    %37 = vector.broadcast %36 : vector<2x1xf32> to vector<2x8xf32>
    %38 = arith.mulf %33, %37 : vector<2x8xf32>
    %c0_20 = arith.constant 0 : index
    %c0_21 = arith.constant 0 : index
    %39 = vector.load %arg10[%c0_20, %c0_21] : memref<2x8xf32, #tpu.memory_space<vmem>>, vector<2x8xf32>
    tpu.vector_store %arg10[%c0_20, %c0_21], %38 {strides = array<i32>} : memref<2x8xf32, #tpu.memory_space<vmem>>, vector<2x8xf32>,
    %cst_22 = arith.constant dense<0xFF800000> : vector<2xf32>
    %40 = vector.multi_reduction <maximumf>, %38, %cst_22 [1] : vector<2x8xf32> to vector<2xf32>
    %41 = vector.shape_cast %40 : vector<2xf32> to vector<2x1xf32>
    %42 = tpu.iota {dimensions = array<i32: 1>} : vector<2x8xi32>
    %43 = vector.broadcast %41 : vector<2x1xf32> to vector<2x8xf32>
    %44 = arith.cmpf oge, %38, %43 : vector<2x8xf32>
    %c8_i32 = arith.constant 8 : i32
    %45 = vector.broadcast %c8_i32 : i32 to vector<2x8xi32>
    %46 = arith.select %44, %42, %45 : vector<2x8xi1>, vector<2x8xi32>
    %cst_23 = arith.constant dense<2147483647> : vector<2xi32>
    %47 = vector.multi_reduction <minsi>, %46, %cst_23 [1] : vector<2x8xi32> to vector<2xi32>
    %48 = vector.shape_cast %47 : vector<2xi32> to vector<2x1xi32>
    %49 = vector.broadcast %48 : vector<2x1xi32> to vector<2x8xi32>
    %50 = arith.cmpi eq, %42, %49 : vector<2x8xi32>
    %51 = arith.extui %50 : vector<2x8xi1> to vector<2x8xi32>
    %52 = arith.sitofp %51 : vector<2x8xi32> to vector<2x8xf32>
    %c0_24 = arith.constant 0 : index
    %c0_25 = arith.constant 0 : index
    %53 = vector.load %arg4[%c0_24, %c0_25] : memref<2x8xf32, #tpu.memory_space<vmem>>, vector<2x8xf32>
    %54 = arith.mulf %53, %52 : vector<2x8xf32>
    %cst_26 = arith.constant dense<0.000000e+00> : vector<2xf32>
    %55 = vector.multi_reduction <add>, %54, %cst_26 [1] : vector<2x8xf32> to vector<2xf32>
    %56 = vector.shape_cast %55 : vector<2xf32> to vector<2x1xf32>
    %c0_27 = arith.constant 0 : index
    %c0_28 = arith.constant 0 : index
    %57 = vector.load %arg5[%c0_27, %c0_28] : memref<2x8xf32, #tpu.memory_space<vmem>>, vector<2x8xf32>
    %58 = arith.mulf %57, %52 : vector<2x8xf32>
    %cst_29 = arith.constant dense<0.000000e+00> : vector<2xf32>
    %59 = vector.multi_reduction <add>, %58, %cst_29 [1] : vector<2x8xf32> to vector<2xf32>
    %60 = vector.shape_cast %59 : vector<2xf32> to vector<2x1xf32>
    %61 = tpu.bitcast %48 : vector<2x1xi32> -> vector<2x1xf32>
    %62 = tpu.iota {dimensions = array<i32: 1>} : vector<2x128xi32>
    %cst_30 = arith.constant 0.000000e+00 : f32
    %63 = vector.broadcast %cst_30 : f32 to vector<2x128xf32>
    %c0_i32_31 = arith.constant 0 : i32
    %64 = vector.broadcast %c0_i32_31 : i32 to vector<2x128xi32>
    %65 = arith.cmpi eq, %62, %64 : vector<2x128xi32>
    %66 = vector.shape_cast %61 : vector<2x1xf32> to vector<2x1xf32>
    %67 = vector.broadcast %66 : vector<2x1xf32> to vector<2x128xf32>
    %68 = arith.select %65, %67, %63 : vector<2x128xi1>, vector<2x128xf32>
    %c1_i32 = arith.constant 1 : i32
    %69 = vector.broadcast %c1_i32 : i32 to vector<2x128xi32>
    %70 = arith.cmpi eq, %62, %69 : vector<2x128xi32>
    %71 = vector.shape_cast %41 : vector<2x1xf32> to vector<2x1xf32>
    %72 = vector.broadcast %71 : vector<2x1xf32> to vector<2x128xf32>
    %73 = arith.select %70, %72, %68 : vector<2x128xi1>, vector<2x128xf32>
    %c2_i32 = arith.constant 2 : i32
    %74 = vector.broadcast %c2_i32 : i32 to vector<2x128xi32>
    %75 = arith.cmpi eq, %62, %74 : vector<2x128xi32>
    %76 = vector.shape_cast %56 : vector<2x1xf32> to vector<2x1xf32>
    %77 = vector.broadcast %76 : vector<2x1xf32> to vector<2x128xf32>
    %78 = arith.select %75, %77, %73 : vector<2x128xi1>, vector<2x128xf32>
    %c3_i32 = arith.constant 3 : i32
    %79 = vector.broadcast %c3_i32 : i32 to vector<2x128xi32>
    %80 = arith.cmpi eq, %62, %79 : vector<2x128xi32>
    %81 = vector.shape_cast %60 : vector<2x1xf32> to vector<2x1xf32>
    %82 = vector.broadcast %81 : vector<2x1xf32> to vector<2x128xf32>
    %83 = arith.select %80, %82, %78 : vector<2x128xi1>, vector<2x128xf32>
    %c0_32 = arith.constant 0 : index
    %c0_33 = arith.constant 0 : index
    %84 = vector.load %arg11[%c0_32, %c0_33] : memref<2x128xf32, #tpu.memory_space<vmem>>, vector<2x128xf32>
    tpu.vector_store %arg11[%c0_32, %c0_33], %83 {strides = array<i32>} : memref<2x128xf32, #tpu.memory_space<vmem>>, vector<2x128xf32>,
    return
  }
  func.func @transform_0(%arg0: i32) -> (i32, i32, i32) {
    %c0_i32 = arith.constant 0 : i32
    %c0_i32_0 = arith.constant 0 : i32
    %c0_i32_1 = arith.constant 0 : i32
    return %arg0, %c0_i32, %c0_i32_0 : i32, i32, i32
  }
  func.func @transform_1(%arg0: i32) -> (i32, i32) {
    %c0_i32 = arith.constant 0 : i32
    %c0_i32_0 = arith.constant 0 : i32
    return %arg0, %c0_i32 : i32, i32
  }
  func.func @transform_2(%arg0: i32) -> (i32, i32) {
    %c0_i32 = arith.constant 0 : i32
    %c0_i32_0 = arith.constant 0 : i32
    return %arg0, %c0_i32 : i32, i32
  }
  func.func @transform_3(%arg0: i32) -> (i32, i32) {
    %c0_i32 = arith.constant 0 : i32
    %c0_i32_0 = arith.constant 0 : i32
    return %arg0, %c0_i32 : i32, i32
  }
  func.func @transform_4(%arg0: i32) -> (i32, i32) {
    %c0_i32 = arith.constant 0 : i32
    %c0_i32_0 = arith.constant 0 : i32
    return %arg0, %c0_i32 : i32, i32
  }
  func.func @transform_5(%arg0: i32) -> (i32, i32) {
    %c0_i32 = arith.constant 0 : i32
    %c0_i32_0 = arith.constant 0 : i32
    %c0_i32_1 = arith.constant 0 : i32
    return %c0_i32, %c0_i32_0 : i32, i32
  }
  func.func @transform_6(%arg0: i32) -> (i32, i32) {
    %c0_i32 = arith.constant 0 : i32
    %c0_i32_0 = arith.constant 0 : i32
    %c0_i32_1 = arith.constant 0 : i32
    return %c0_i32, %c0_i32_0 : i32, i32
  }
  func.func @transform_7(%arg0: i32) -> (i32, i32) {
    %c0_i32 = arith.constant 0 : i32
    %c0_i32_0 = arith.constant 0 : i32
    %c0_i32_1 = arith.constant 0 : i32
    return %c0_i32, %c0_i32_0 : i32, i32
  }
  func.func @transform_8(%arg0: i32) -> (i32, i32) {
    %c0_i32 = arith.constant 0 : i32
    %c0_i32_0 = arith.constant 0 : i32
    %c0_i32_1 = arith.constant 0 : i32
    return %c0_i32, %c0_i32_0 : i32, i32
  }
  func.func @transform_9(%arg0: i32) -> (i32, i32) {
    %c0_i32 = arith.constant 0 : i32
    %c0_i32_0 = arith.constant 0 : i32
    return %arg0, %c0_i32 : i32, i32
  }
  func.func @transform_10(%arg0: i32) -> (i32, i32) {
    %c0_i32 = arith.constant 0 : i32
    %c0_i32_0 = arith.constant 0 : i32
    return %arg0, %c0_i32 : i32, i32
  }
}

</mosaic_0001>

<bundles_post_ra>
// kernel: tpu_custom_call.1
= control target key start
LH: loop header
LB: loop body
LE: loop exit
PB: predicated region body
PF: predicated region fallthrough
CT: control target
= control target key end

     0   :  { %s580_s0 = inlined_call_operand.hbm [shape: f32[2,8,32], index: 0, kind: input, shape index: {}]   ;;  %s581_s1 = inlined_call_operand.vmem [shape: f32[2,32], index: 1, kind: input, shape index: {}]   ;;  %s582_s2 = inlined_call_operand.hbm [shape: s32[2,8], index: 2, kind: input, shape index: {}]   ;;  %s583_s3 = inlined_call_operand.vmem [shape: f32[2,8], index: 3, kind: input, shape index: {}]   ;;  %s584_s4 = inlined_call_operand.hbm [shape: f32[2,8], index: 4, kind: input, shape index: {}]   ;;  %s585_s5 = inlined_call_operand.hbm [shape: f32[32,32], index: 5, kind: input, shape index: {}]   ;;  %s586_s6 = inlined_call_operand.vmem [shape: f32[1,32], index: 6, kind: input, shape index: {}]   ;;  %s587_s7 = inlined_call_operand.vmem [shape: f32[1,32], index: 7, kind: input, shape index: {}]   ;;  %s588_s8 = inlined_call_operand.<no memory space> [shape: f32[1,1], index: 8, kind: input, shape index: {}]   ;;  %s589_s9 = inlined_call_operand.hbm [shape: f32[2,8], index: 9, kind: output, shape index: {0}]   ;;  %s590_s10 = inlined_call_operand.hbm [shape: f32[2,128], index: 10, kind: output, shape index: {1}]  }
   0x1   :  { %v16_v0 = vstv %s588_s8 }
   0x2   :  { %17 = vst [vmem:[#allocation2] sm:$0x1] %v16_v0 }
   0x3   :  { %18 = vsyncpa [#allocation4], 0 }
   0x4   :  { %19 = vsyncpa [#allocation7], 0 }
   0x5   :  { %20 = vsyncpa [#allocation10], 0 }
   0x6   :  { %21 = vsyncpa [#allocation5], 0  ;;  %s43_s17 = sshll.u32 %s582_s2, 4  ;;  %s44_s17 = int_to_ptr.hbm [resolvable:$true] %s43_s17 }
   0x7   :  { %22 = vsyncpa [#allocation13], 0  ;;  %s462_s18 = smov [#allocation6]   ;;  %s27_s22 = sshll.u32 %s580_s0, 4  ;;  %s28_s22 = int_to_ptr.hbm [resolvable:$true] %s27_s22 }
   0x8   :  { %s45_s19 = sshll.u32 %s462_s18, 4  ;;  %s463_s8 = smov [#allocation3]   ;;  %s46_s19 = int_to_ptr.vmem [resolvable:$true] %s45_s19 }
   0x9   :  { %48 = dma.hbm_to_vmem [thread:$0]  %s44_s17, 32, %s46_s19, [#allocation7]  }
   0xa   :  { %s29_s23 = sshll.u32 %s463_s8, 4  ;;  %s464_s24 = smov 128   ;;  %s30_s23 = int_to_ptr.vmem [resolvable:$true] %s29_s23 }
   0xb   :  { %s465_s25 = smov 8   ;;  %s56_s2 = sshll.u32 %s584_s4, 4  ;;  %s57_s2 = int_to_ptr.hbm [resolvable:$true] %s56_s2 }
   0xc   :  { %35 = dma.hbm_to_vmem [thread:$0]  %s28_s22, 256, %s30_s23, [#allocation4], %s464_s24, %s464_s24, %s465_s25  }
   0xd   :  { %s466_s28 = smov [#allocation8]   ;;  %s66_s0 = sshll.u32 %s585_s5, 4  ;;  %s67_s0 = int_to_ptr.hbm [resolvable:$true] %s66_s0 }
   0xe   :  { %s58_s29 = sshll.u32 %s466_s28, 4  ;;  %s467_s12 = smov [#allocation9]   ;;  %s59_s29 = int_to_ptr.vmem [resolvable:$true] %s58_s29 }
   0xf   :  { %61 = dma.hbm_to_vmem [thread:$0]  %s57_s2, 32, %s59_s29, [#allocation7]  }
  0x10   :  { %s68_s13 = sshll.u32 %s467_s12, 4  ;;  %s69_s13 = int_to_ptr.vmem [resolvable:$true] %s68_s13 }
  0x11   :  { %74 = dma.hbm_to_vmem [thread:$0]  %s67_s0, 512, %s69_s13, [#allocation10], %s464_s24, %s464_s24, %s465_s25  }
  0x12   :  { %452 = dma.done.wait [#allocation4], 256  }
  0x13   :  { %453 = vsyncadd [#allocation4], 4294967040 }
  0x14   :  { %454 = dma.done.wait [#allocation7], 64  }
  0x15   :  { %455 = vsyncadd [#allocation7], 4294967232 }
  0x16   :  { %456 = dma.done.wait [#allocation10], 512  }
  0x17   :  { %457 = vsyncadd [#allocation10], 4294966784  ;;  %v101_v1 = vld [vmem:[#allocation9 + $0x18] sm:$0xff]  ;;  %v100_v2 = vld [vmem:[#allocation9 + $0x10] sm:$0xff]  ;;  %vm135_vm0 = vcmask 254976   ;;  %vm106_vm1 = vcmask 261120   ;;  %v184_v37 = vlaneseq }
  0x18   :  { %122 = vmatpush.msra.mxu0 %v101_v1  ;;  %v99_v3 = vld [vmem:[#allocation9 + $0x8] sm:$0xff]  ;;  %v98_v6 = vld [vmem:[#allocation9] sm:$0xff]  ;;  %v468_v9 = vmov 0   ;;  %v147_v22 = vld [vmem:[#allocation3 + $0x8] sm:$0xff]  ;;  %vm188_vm2 = vcmask 1041409   ;;  %vm192_vm4 = vcmask 58368  }
  0x19   :  { %v297_v4 = vld [vmem:[%s587_s7] ss:$0 sm:$0xff]  ;;  %295 = vset.pattern.permute.xlu0 %v468_v9  ;;  %296 = vset.pattern.permute.xlu2 %v468_v9  ;;  %v146_v16 = vld [vmem:[#allocation3] sm:$0xff]  ;;  %v554_v38 = vand.u32 127, %v184_v37  ;;  %v174_v39 = vld [vmem:[#allocation6] sm:$0x3] }
  0x1a   :  { %123 = vmatpush.msra.mxu0 %v100_v2  ;;  %v97_v5 = vld [vmem:[%s581_s1] sm:$0x3]  ;;  %vm175_vm3 = vcmp.gt.s32.totalorder %v174_v39, 0  ;;  %s469_s1 = smov [#allocation11]   ;;  %s255_s19 = sshll.u32 %s589_s9, 4  ;;  %s256_s19 = int_to_ptr.hbm [resolvable:$true] %s255_s19 }
  0x1b   :  { %v134_v7 = vmul.f32 %v297_v4, %v97_v5  ;;  %v299_v10 = vld [vmem:[#allocation2] ss:$0 sm:$0xff]  ;;  %vm239_vm8 = vcmp.eq.s32.totalorder %v554_v38, 0  ;;  %vm241_vm9 = vcmp.eq.s32.totalorder %v554_v38, 1  ;;  %vm243_vm10 = vcmp.eq.s32.totalorder %v554_v38, 2  ;;  %s266_s23 = sshll.u32 %s590_s10, 4  ;;  %s267_s23 = int_to_ptr.hbm [resolvable:$true] %s266_s23 }
  0x1c   :  { %124 = vmatpush.msra.mxu0 %v99_v3  ;;  %v298_v13 = vld [vmem:[%s586_s6] ss:$0 sm:$0xff]  ;;  %s253_s6 = sshll.u32 %s469_s1, 4  ;;  %vm245_vm11 = vcmp.eq.s32.totalorder %v554_v38, 3  ;;  %s254_s6 = int_to_ptr.vmem [resolvable:$true] %s253_s6 }
  0x1d   :  { %v136_v8 = vsel %vm135_vm0, %v134_v7, 0.0  ;;  %v470_v7 = vmov 0.0  }
  0x1e   :  { %125 = vmatpush.msra.mxu0 %v98_v6  ;;  %137 = vadd.xlane.f32.xlu0 %v136_v8  ;;  %v228_v6 = vld [vmem:[%s583_s3] sm:$0x3]  ;;  %s471_s3 = smov [#allocation12]  }
  0x1f   :  { %283 = vmatmul.msk.f32.vlgmr.msra.gmra.mxu0 %vm106_vm1, %v97_v5  ;;  %v233_v5 = vld [vmem:[#allocation8] sm:$0x3]  ;;  %s264_s9 = sshll.u32 %s471_s3, 4  ;;  %s265_s9 = int_to_ptr.vmem [resolvable:$true] %s264_s9 }
  0x91   :  { %v138_v11 = vpop.xlane.xlu0 %137 }
  0x92   :  { %v143_v12 = vadd.f32 %v299_v10, %v138_v11 }
  0x94   :  { %162 = vperm.xlu0 %295, %v143_v12  }
  0x9c   :  { %v127_v14 = vpop.f32.mrf.mxu0 }
  0x9d   :  { %v128_v15 = vadd.f32 %v298_v13, %v127_v14 }
  0x9f   :  { %v145_v17 = vrot.slane %v128_v15, 1  ;;  %v148_v18 = vperm.slane %v128_v15, 0 }
  0xa1   :  { %v152_v19 = vmul.f32 %v148_v18, %v146_v16  ;;  %v149_v20 = vperm.slane %v145_v17, 0 }
  0xa3   :  { %v154_v21 = vsel %vm106_vm1, %v152_v19, 0.0  ;;  %v153_v23 = vmul.f32 %v149_v20, %v147_v22 }
  0xa4   :  { %155 = vadd.xlane.f32.xlu1 %v154_v21 }
  0xa5   :  { %v157_v24 = vsel %vm106_vm1, %v153_v23, 0.0 }
  0xac   :  { %158 = vadd.xlane.f32.xlu1 %v157_v24 }
 0x106   :  { %v163_v25 = vpop.permute.xlu0 %162 }
 0x107   :  { %v164_v26 = vperm.slane %v163_v25, 0  ;;  %v165_v29 = vperm.slane %v163_v25, 1 }
 0x117   :  { %v156_v27 = vpop.xlane.xlu1 %155 }
 0x118   :  { %v168_v28 = vadd.f32 %v164_v26, %v156_v27 }
 0x11a   :  { %300 = vtanh.f32 %v168_v28 }
 0x11f   :  { %v159_v30 = vpop.xlane.xlu1 %158 }
 0x120   :  { %v301_v31 = vpop.eup %300  ;;  %v169_v32 = vadd.f32 %v165_v29, %v159_v30 }
 0x121   :  { %v172_v33 = vmul.f32 10.0, %v301_v31 }
 0x122   :  { %302 = vtanh.f32 %v169_v32 }
 0x123   :  { %179 = vperm.xlu2 %296, %v172_v33  }
 0x128   :  { %v303_v34 = vpop.eup %302 }
 0x129   :  { %v173_v35 = vmul.f32 10.0, %v303_v34 }
 0x12b   :  { %182 = vperm.xlu2 %296, %v173_v35  }
 0x17d   :  { %v180_v36 = vpop.permute.xlu2 %179 }
 0x17e   :  { %v186_v41 = vperm.slane %v180_v36, %v554_v38 }
 0x185   :  { %v183_v40 = vpop.permute.xlu2 %182 }
 0x186   :  { %v187_v42 = vperm.slane %v183_v40, %v554_v38 }
 0x188   :  { %v189_v43 = vsel %vm188_vm2, %v187_v42, %v186_v41 }
 0x189   :  { %v191_v44 = vsel %vm175_vm3, -1e+30, %v189_v43 }
 0x18a   :  { %v193_v45 = vsel %vm192_vm4, %v191_v44, -inf }
 0x18b   :  { %194 = vmax.xlane.f32.xlu1 %v193_v45 }
 0x1fe   :  { %v195_v46 = vpop.xlane.xlu1 %194 }
 0x1ff   :  { %v196_v47 = vsub.f32 %v191_v44, %v195_v46 }
 0x201   :  { %v197_v48 = vmul.f32 1.442695, %v196_v47 }
 0x203   :  { %304 = vpow2.f32 %v197_v48 }
 0x209   :  { %v305_v49 = vpop.eup %304 }
 0x20a   :  { %v199_v50 = vsel %vm192_vm4, %v305_v49, 0.0 }
 0x20b   :  { %200 = vadd.xlane.f32.xlu2 %v199_v50 }
 0x27e   :  { %v201_v51 = vpop.xlane.xlu2 %200 }
 0x27f   :  { %306 = vrcp.f32 %v201_v51 }
 0x285   :  { %v307_v52 = vpop.eup %306 }
 0x286   :  { %v203_v53 = vmul.f32 %v307_v52, %v305_v49 }
 0x288   :  { %v205_v54 = vsel %vm192_vm4, %v203_v53, -inf  ;;  %204 = vst.msk [vmem:[#allocation11] sm:$0x3] %vm192_vm4, %v203_v53 }
 0x289   :  { %206 = vmax.xlane.f32.xlu1 %v205_v54  ;;  %258 = dma.vmem_to_hbm [thread:$0]  %s254_s6, 32, %s256_s19, [#allocation5]  }
 0x2fc   :  { %v207_v55 = vpop.xlane.xlu1 %206 }
 0x2fd   :  { %vm208_vm5 = vcmp.ge.f32.partialorder %v203_v53, %v207_v55 }
 0x2fe   :  { %v209_v56 = vsel %vm208_vm5, %v554_v38, 8 }
 0x2ff   :  { %v210_v57 = vsel %vm192_vm4, %v209_v56, 2147483647 }
 0x300   :  { %v212_v58 = vshra.s32 %v210_v57, 16  ;;  %v211_v60 = vand.u32 65535, %v210_v57 }
 0x302   :  { %v214_v59 = vcvt.s32.f32 %v212_v58  ;;  %v213_v62 = vcvt.s32.f32 %v211_v60 }
 0x304   :  { %215 = vmin.xlane.f32.xlu1 %v214_v59 }
 0x377   :  { %v216_v61 = vpop.xlane.xlu1 %215 }
 0x378   :  { %vm217_vm6 = vcmp.eq.f32.partialorder %v214_v59, %v216_v61  ;;  %v222_v0 = vcvt.f32.s32 %v216_v61 }
 0x379   :  { %v218_v63 = vsel %vm217_vm6, %v213_v62, inf }
 0x37a   :  { %219 = vmin.xlane.f32.xlu1 %v218_v63  ;;  %v223_v2 = vshll.u32 %v222_v0, 16 }
 0x3ed   :  { %v220_v1 = vpop.xlane.xlu1 %219 }
 0x3ee   :  { %v221_v3 = vcvt.f32.s32 %v220_v1 }
 0x3f0   :  { %v224_v4 = vadd.s32 %v223_v2, %v221_v3 }
 0x3f2   :  { %vm225_vm7 = vcmp.eq.s32.totalorder %v554_v38, %v224_v4  ;;  %v240_v13 = vsel %vm239_vm8, %v224_v4, 0.0 }
 0x3f3   :  { %v284_v8 = vsel %vm225_vm7, 1.0, %v470_v7  ;;  %v242_v15 = vsel %vm241_vm9, %v207_v55, %v240_v13 }
 0x3f4   :  { %v234_v9 = vmul.f32 %v284_v8, %v233_v5  ;;  %v229_v10 = vmul.f32 %v284_v8, %v228_v6 }
 0x3f6   :  { %v235_v11 = vsel %vm192_vm4, %v234_v9, 0.0  ;;  %v230_v12 = vsel %vm192_vm4, %v229_v10, 0.0 }
 0x3f7   :  { %236 = vadd.xlane.f32.xlu1 %v235_v11  ;;  %231 = vadd.xlane.f32.xlu0 %v230_v12 }
 0x46a   :  { %v237_v14 = vpop.xlane.xlu1 %236  ;;  %v232_v16 = vpop.xlane.xlu0 %231 }
 0x46b   :  { %v244_v17 = vsel %vm243_vm10, %v232_v16, %v242_v15 }
 0x46c   :  { %v246_v18 = vsel %vm245_vm11, %v237_v14, %v244_v17 }
 0x46d   :  { %247 = vst [vmem:[#allocation12] sm:$0x3] %v246_v18 }
 0x46e   :  { %269 = dma.vmem_to_hbm [thread:$0]  %s265_s9, 32, %s267_s23, [#allocation13]  }
 0x46f   :  { %458 = dma.done.wait [#allocation5], 32  }
 0x470   :  { %459 = vsyncadd [#allocation5], 4294967264 }
 0x471   :  { %460 = dma.done.wait [#allocation13], 32  }
 0x472   :  { %461 = vsyncadd [#allocation13], 4294967264 }
 0x473   :  { %278 = vsyncpa [#allocation4], 1 }
 0x474   :  { %279 = vsyncpa [#allocation7], 1 }
 0x475   :  { %280 = vsyncpa [#allocation10], 1 }
 0x476   :  { %281 = vsyncpa [#allocation5], 1 }
 0x477   :  { %282 = vsyncpa [#allocation13], 1 }

</bundles_post_ra>
